<compile_context>
chip_gen: v7x
topology: tpu7x:2x2x1
jax: 0.10.0
libtpu: 0.0.40
codegen_flags: <defaults>
</compile_context>

<pallas_src>
import functools

import jax
import jax.numpy as jnp
from jax import lax
from jax.experimental import pallas as pl
from jax.experimental.pallas import tpu as pltpu


def _round_up(x, m):
    return ((x + m - 1) // m) * m


def _choose_tiling(n, max_itemsize):
    """Pick (lanes, rows, tile_rows, chunk_rows) for a length-n stream."""
    # Lane width: largest lane-dense width that divides n, else 128 (+tiny pad).
    lanes = 128
    for cand in (2048, 1024, 512, 256, 128):
        if n % cand == 0:
            lanes = cand
            break
    rows = -(-n // lanes)            # cdiv
    rows = max(rows, 8)              # tiny inputs: pad up to >= 8 rows (cheap)

    # In-kernel reduction chunk: ~16K elements (~16 f32 vregs per temporary),
    # multiple of 8 sublanes.
    chunk_rows = max(8, (16384 // lanes) // 8 * 8)

    # Dtype-aware tile budget: ~4 MiB of the widest input dtype per input.
    tile_bytes = 4 * 1024 * 1024
    tm_max = max(chunk_rows,
                 (tile_bytes // (lanes * max_itemsize)) // chunk_rows * chunk_rows)
    tm = min(tm_max, _round_up(rows, chunk_rows))

    # Guarantee >= 2 tiles when there is enough work, so the "parallel" grid
    # axis actually gives both v7x TensorCores something to stream.
    if rows > chunk_rows and tm >= rows:
        tm = max(chunk_rows, _round_up(-(-rows // 2), chunk_rows))
    return lanes, rows, tm, chunk_rows


def _mse_loss_kernel(pred_ref, targ_ref, mask_ref, loss_part_ref, mask_part_ref,
                     *, rows, tm, chunk_rows, lanes, needs_row_mask):
    tile_row0 = pl.program_id(0) * tm
    n_chunks = tm // chunk_rows

    # Row index inside a chunk (loop-invariant); only needed for tail masking.
    row_iota = (lax.broadcasted_iota(jnp.int32, (chunk_rows, lanes), 0)
                if needs_row_mask else None)

    def body(k, carry):
        loss_acc, mask_acc = carry
        r0 = pl.multiple_of(k * chunk_rows, chunk_rows)
        p = pred_ref[pl.ds(r0, chunk_rows), :].astype(jnp.float32)
        t = targ_ref[pl.ds(r0, chunk_rows), :].astype(jnp.float32)
        m = mask_ref[pl.ds(r0, chunk_rows), :].astype(jnp.float32)

        res = p - t
        sq = m * res * res

        if needs_row_mask:
            # Rows at/after `rows` come from the unspecified (OOB) region of a
            # partial block: force their contribution to exactly 0.  The
            # select also kills any NaN/Inf garbage (0 * NaN would not).
            limit = rows - (tile_row0 + r0)
            valid = row_iota < limit
            sq = jnp.where(valid, sq, 0.0)
            m = jnp.where(valid, m, 0.0)

        # VALU-only sublane fold down to one (8, lanes) partial per quantity;
        # the (…, 8, lanes) split aligns with the (8,128) vreg tiling.
        loss_acc = loss_acc + jnp.sum(sq.reshape(chunk_rows // 8, 8, lanes), axis=0)
        mask_acc = mask_acc + jnp.sum(m.reshape(chunk_rows // 8, 8, lanes), axis=0)
        return loss_acc, mask_acc

    zero = jnp.zeros((8, lanes), jnp.float32)
    loss_acc, mask_acc = lax.fori_loop(0, n_chunks, body, (zero, zero))
    loss_part_ref[...] = loss_acc
    mask_part_ref[...] = mask_acc


def mse_loss_pallas(prediction, target, mask):
    """Masked MSE loss with batch-based reduction.

    prediction, target, mask: [B, H, W] (any float/bool dtype).
    Returns a scalar float32.
    """
    B, H, W = prediction.shape
    n = B * H * W

    max_itemsize = max(jnp.dtype(prediction.dtype).itemsize,
                       jnp.dtype(target.dtype).itemsize,
                       jnp.dtype(mask.dtype).itemsize)
    lanes, rows, tm, chunk_rows = _choose_tiling(n, max_itemsize)

    pred = prediction.reshape(-1)
    targ = target.reshape(-1)
    msk = mask.reshape(-1)

    total = rows * lanes
    if total != n:
        # Only hit when n is not lane-aligned (n % 128 != 0) or the input is
        # tiny (< 8 rows).  Padded region has mask == 0 and pred == targ == 0,
        # so it contributes nothing.  Row padding up to a tile multiple is
        # handled in-kernel instead (no full-array pad copy in the common case).
        pad = total - n
        pred = jnp.pad(pred, (0, pad))
        targ = jnp.pad(targ, (0, pad))
        msk = jnp.pad(msk, (0, pad))

    pred = pred.reshape(rows, lanes)
    targ = targ.reshape(rows, lanes)
    msk = msk.reshape(rows, lanes)

    num_tiles = pl.cdiv(rows, tm)
    needs_row_mask = (rows % tm) != 0

    kernel = functools.partial(
        _mse_loss_kernel, rows=rows, tm=tm, chunk_rows=chunk_rows,
        lanes=lanes, needs_row_mask=needs_row_mask)

    in_spec = pl.BlockSpec((tm, lanes), lambda i: (i, 0))
    out_spec = pl.BlockSpec((8, lanes), lambda i: (i, 0))

    in_bytes = n * (jnp.dtype(prediction.dtype).itemsize
                    + jnp.dtype(target.dtype).itemsize
                    + jnp.dtype(mask.dtype).itemsize)
    cost = pl.CostEstimate(
        flops=5 * n,
        transcendentals=0,
        bytes_accessed=in_bytes + 2 * num_tiles * 8 * lanes * 4,
    )

    loss_part, mask_part = pl.pallas_call(
        kernel,
        out_shape=(
            jax.ShapeDtypeStruct((num_tiles * 8, lanes), jnp.float32),
            jax.ShapeDtypeStruct((num_tiles * 8, lanes), jnp.float32),
        ),
        grid=(num_tiles,),
        in_specs=[in_spec, in_spec, in_spec],
        out_specs=(out_spec, out_spec),
        compiler_params=pltpu.CompilerParams(
            # Per-tile partial outputs -> no cross-step accumulator, so the
            # grid axis can be parallel (lets both v7x TCs stream from HBM).
            dimension_semantics=("parallel",),
            vmem_limit_bytes=48 * 1024 * 1024,
        ),
        cost_estimate=cost,
    )(pred, targ, msk)

    loss_sum = jnp.sum(loss_part)
    divisor = 2.0 * jnp.sum(mask_part)
    # Match PyTorch: return 0 when divisor == 0.  Double-where keeps the
    # division grad-safe if this loss is ever differentiated.
    safe = jnp.where(divisor == 0.0, jnp.float32(1.0), divisor)
    return jnp.where(divisor == 0.0, jnp.float32(0.0), loss_sum / safe)


def _reference(prediction, target, mask):
    res = prediction.astype(jnp.float32) - target.astype(jnp.float32)
    m = mask.astype(jnp.float32)
    image_loss = jnp.sum(m * res * res, axis=(1, 2))
    M = jnp.sum(m, axis=(1, 2))
    div = jnp.sum(2.0 * M)
    return jnp.where(div == 0.0, 0.0, jnp.sum(image_loss) / div)


if __name__ == "__main__":
    key = jax.random.PRNGKey(0)
    ks = jax.random.split(key, 9)

    # Case 1: small, lane-aligned, single tile (tiny-row padding path).
    B, H, W = 2, 16, 16
    prediction = jax.random.normal(ks[0], (B, H, W), dtype=jnp.float32)
    target = jax.random.normal(ks[1], (B, H, W), dtype=jnp.float32)
    mask = (jax.random.uniform(ks[2], (B, H, W)) > 0.3).astype(jnp.float32)
    out = jax.block_until_ready(mse_loss_pallas(prediction, target, mask))
    ref = _reference(prediction, target, mask)
    assert jnp.allclose(out, ref, rtol=1e-5, atol=1e-6), (out, ref)

    # Case 2: ragged shape exercising the zero-mask lane-padding path.
    B2, H2, W2 = 3, 17, 9
    p2 = jax.random.normal(ks[3], (B2, H2, W2), dtype=jnp.float32)
    t2 = jax.random.normal(ks[4], (B2, H2, W2), dtype=jnp.float32)
    m2 = (jax.random.uniform(ks[5], (B2, H2, W2)) > 0.5).astype(jnp.float32)
    out2 = jax.block_until_ready(mse_loss_pallas(p2, t2, m2))
    ref2 = _reference(p2, t2, m2)
    assert jnp.allclose(out2, ref2, rtol=1e-5, atol=1e-6), (out2, ref2)

    # Case 3: lane-aligned, no padding, multiple tiles with an in-kernel
    # masked tail tile (the new no-jnp.pad fast path).
    B3, H3, W3 = 4, 40, 128
    p3 = jax.random.normal(ks[6], (B3, H3, W3), dtype=jnp.float32)
    t3 = jax.random.normal(ks[7], (B3, H3, W3), dtype=jnp.float32)
    m3 = (jax.random.uniform(ks[8], (B3, H3, W3)) > 0.4).astype(jnp.float32)
    out3 = jax.block_until_ready(mse_loss_pallas(p3, t3, m3))
    ref3 = _reference(p3, t3, m3)
    assert jnp.allclose(out3, ref3, rtol=1e-5, atol=1e-6), (out3, ref3)

    # Case 4: all-zero mask -> divisor == 0 -> exact 0.
    z_mask = jnp.zeros((B, H, W), jnp.float32)
    out4 = jax.block_until_ready(mse_loss_pallas(prediction, target, z_mask))
    assert jnp.allclose(out4, 0.0), out4

    print("KERNEL_OK")
</pallas_src>

<mosaic_0001>
module attributes {stable_mosaic.version = 11 : i64} {
  func.func @_mse_loss_kernel(%arg0: i32, %arg1: memref<32x512xf32, #tpu.memory_space<vmem>>, %arg2: memref<32x512xf32, #tpu.memory_space<vmem>>, %arg3: memref<32x512xf32, #tpu.memory_space<vmem>>, %arg4: memref<8x512xf32, #tpu.memory_space<vmem>>, %arg5: memref<8x512xf32, #tpu.memory_space<vmem>>) attributes {dimension_semantics = [#tpu.dimension_semantics<parallel>], iteration_bounds = array<i64: 1>, scalar_prefetch = 0 : i64, scratch_operands = 0 : i64, tpu.core_type = #tpu.core_type<tc>, window_params = [{transform_indices = @transform_0, window_bounds = array<i64: 32, 512>}, {transform_indices = @transform_1, window_bounds = array<i64: 32, 512>}, {transform_indices = @transform_2, window_bounds = array<i64: 32, 512>}, {transform_indices = @transform_3, window_bounds = array<i64: 8, 512>}, {transform_indices = @transform_4, window_bounds = array<i64: 8, 512>}]} {
    %c32_i32 = arith.constant 32 : i32
    %0 = arith.muli %arg0, %c32_i32 : i32
    %1 = tpu.iota {dimensions = array<i32: 0>} : vector<32x512xi32>
    %cst = arith.constant 0.000000e+00 : f32
    %2 = vector.broadcast %cst : f32 to vector<8x512xf32>
    %c0_i32 = arith.constant 0 : i32
    %c32_i32_0 = arith.constant 32 : i32
    %3 = arith.muli %c0_i32, %c32_i32_0 : i32
    %4 = tpu.assume_multiple %3, 32 : i32
    %5 = arith.index_cast %4 : i32 to index
    %c0 = arith.constant 0 : index
    %6 = vector.load %arg1[%5, %c0] : memref<32x512xf32, #tpu.memory_space<vmem>>, vector<32x512xf32>
    %7 = arith.index_cast %4 : i32 to index
    %c0_1 = arith.constant 0 : index
    %8 = vector.load %arg2[%7, %c0_1] : memref<32x512xf32, #tpu.memory_space<vmem>>, vector<32x512xf32>
    %9 = arith.index_cast %4 : i32 to index
    %c0_2 = arith.constant 0 : index
    %10 = vector.load %arg3[%9, %c0_2] : memref<32x512xf32, #tpu.memory_space<vmem>>, vector<32x512xf32>
    %11 = arith.subf %6, %8 : vector<32x512xf32>
    %12 = arith.mulf %10, %11 : vector<32x512xf32>
    %13 = arith.mulf %12, %11 : vector<32x512xf32>
    %14 = arith.addi %0, %4 : i32
    %c8_i32 = arith.constant 8 : i32
    %15 = arith.subi %c8_i32, %14 : i32
    %16 = vector.broadcast %15 : i32 to vector<32x512xi32>
    %17 = arith.cmpi slt, %1, %16 : vector<32x512xi32>
    %cst_3 = arith.constant 0.000000e+00 : f32
    %18 = vector.broadcast %cst_3 : f32 to vector<32x512xf32>
    %19 = arith.select %17, %13, %18 : vector<32x512xi1>, vector<32x512xf32>
    %cst_4 = arith.constant 0.000000e+00 : f32
    %20 = vector.broadcast %cst_4 : f32 to vector<32x512xf32>
    %21 = arith.select %17, %10, %20 : vector<32x512xi1>, vector<32x512xf32>
    %22 = vector.shape_cast %19 : vector<32x512xf32> to vector<4x8x512xf32>
    %cst_5 = arith.constant dense<0.000000e+00> : vector<8x512xf32>
    %23 = vector.multi_reduction <add>, %22, %cst_5 [0] : vector<4x8x512xf32> to vector<8x512xf32>
    %24 = arith.addf %2, %23 : vector<8x512xf32>
    %25 = vector.shape_cast %21 : vector<32x512xf32> to vector<4x8x512xf32>
    %cst_6 = arith.constant dense<0.000000e+00> : vector<8x512xf32>
    %26 = vector.multi_reduction <add>, %25, %cst_6 [0] : vector<4x8x512xf32> to vector<8x512xf32>
    %27 = arith.addf %2, %26 : vector<8x512xf32>
    %c1_i32 = arith.constant 1 : i32
    %c0_7 = arith.constant 0 : index
    %c0_8 = arith.constant 0 : index
    %28 = vector.load %arg4[%c0_7, %c0_8] : memref<8x512xf32, #tpu.memory_space<vmem>>, vector<8x512xf32>
    tpu.vector_store %arg4[%c0_7, %c0_8], %24 {strides = array<i32>} : memref<8x512xf32, #tpu.memory_space<vmem>>, vector<8x512xf32>,
    %c0_9 = arith.constant 0 : index
    %c0_10 = arith.constant 0 : index
    %29 = vector.load %arg5[%c0_9, %c0_10] : memref<8x512xf32, #tpu.memory_space<vmem>>, vector<8x512xf32>
    tpu.vector_store %arg5[%c0_9, %c0_10], %27 {strides = array<i32>} : memref<8x512xf32, #tpu.memory_space<vmem>>, vector<8x512xf32>,
    return
  }
  func.func @transform_0(%arg0: i32) -> (i32, i32) {
    %c0_i32 = arith.constant 0 : i32
    %c0_i32_0 = arith.constant 0 : i32
    return %arg0, %c0_i32 : i32, i32
  }
  func.func @transform_1(%arg0: i32) -> (i32, i32) {
    %c0_i32 = arith.constant 0 : i32
    %c0_i32_0 = arith.constant 0 : i32
    return %arg0, %c0_i32 : i32, i32
  }
  func.func @transform_2(%arg0: i32) -> (i32, i32) {
    %c0_i32 = arith.constant 0 : i32
    %c0_i32_0 = arith.constant 0 : i32
    return %arg0, %c0_i32 : i32, i32
  }
  func.func @transform_3(%arg0: i32) -> (i32, i32) {
    %c0_i32 = arith.constant 0 : i32
    %c0_i32_0 = arith.constant 0 : i32
    return %arg0, %c0_i32 : i32, i32
  }
  func.func @transform_4(%arg0: i32) -> (i32, i32) {
    %c0_i32 = arith.constant 0 : i32
    %c0_i32_0 = arith.constant 0 : i32
    return %arg0, %c0_i32 : i32, i32
  }
}

</mosaic_0001>

<bundles_post_ra>
// kernel: tpu_custom_call.1
= control target key start
LH: loop header
LB: loop body
LE: loop exit
PB: predicated region body
PF: predicated region fallthrough
CT: control target
= control target key end

     0   :  { %10 = vsyncpa [#allocation3], 0  ;;  %s503_s0 = inlined_call_operand.hbm [shape: f32[8,512], index: 0, kind: input, shape index: {}]   ;;  %s504_s1 = inlined_call_operand.hbm [shape: f32[8,512], index: 1, kind: input, shape index: {}]   ;;  %s505_s2 = inlined_call_operand.hbm [shape: f32[8,512], index: 2, kind: input, shape index: {}]   ;;  %s506_s3 = inlined_call_operand.hbm [shape: f32[8,512], index: 3, kind: output, shape index: {0}]   ;;  %s507_s4 = inlined_call_operand.hbm [shape: f32[8,512], index: 4, kind: output, shape index: {1}]  }
   0x1   :  { %11 = vsyncpa [#allocation6], 0 }
   0x2   :  { %12 = vsyncpa [#allocation4], 0 }
   0x3   :  { %13 = vsyncpa [#allocation10], 0 }
   0x4   :  { %18 = vsyncadd [#allocation3], 1536  ;;  %s402_s15 = smov [#allocation2]   ;;  %s284_s19 = scalar_lea.hbm %s503_s0, 512 }
   0x5   :  { %s19_s16 = sshll.u32 %s402_s15, 4  ;;  %p285_p0 = scmp.ne.s32.totalorder %s503_s0, %s284_s19  ;;  %s20_s16 = int_to_ptr.vmem [resolvable:$true] %s19_s16 }
   0x6   :  { %p288_p1 = scmp.lt.u32.totalorder %s284_s19, %s503_s0 }
   0x8   :  { %p290_p2 = pnand %p288_p1, %p285_p0 }
   0xa   :  { %293 = shalt.err (!%p290_p2)
}
   0xb   :  { %s294_s24 = scalar_lea.vmem %s20_s16, 512  ;;  %s298_s25 = scalar_lea.vmem %s20_s16, 2048 }
   0xc   :  { %p295_p3 = scmp.ne.s32.totalorder %s20_s16, %s294_s24  ;;  %p299_p4 = scmp.lt.s32.totalorder %s20_s16, %s20_s16 }
   0xd   :  { %p300_p5 = scmp.lt.s32.totalorder %s298_s25, %s294_s24 }
   0xf   :  { %p301_p6 = por %p300_p5, %p299_p4 }
  0x11   :  { %p302_p7 = pnand %p301_p6, %p295_p3 }
  0x13   :  { %305 = shalt.err (!%p302_p7)
}
  0x14   :  { %s403_s26 = smov 512   ;;  %s404_s27 = smov 32  }
  0x15   :  { %25 = dma.hbm_to_vmem [thread:$0]  %s503_s0, 512, %s20_s16, [#allocation3], %s403_s26, %s403_s26, %s404_s27  }
  0x16   :  { %30 = vsyncadd [#allocation6], 1536  ;;  %s405_s30 = smov [#allocation5]   ;;  %s306_s8 = scalar_lea.hbm %s504_s1, 512 }
  0x17   :  { %s31_s5 = sshll.u32 %s405_s30, 4  ;;  %p307_p8 = scmp.ne.s32.totalorder %s504_s1, %s306_s8  ;;  %s32_s5 = int_to_ptr.vmem [resolvable:$true] %s31_s5 }
  0x18   :  { %p310_p9 = scmp.lt.u32.totalorder %s306_s8, %s504_s1 }
  0x1a   :  { %p312_p10 = pnand %p310_p9, %p307_p8 }
  0x1c   :  { %315 = shalt.err (!%p312_p10)
}
  0x1d   :  { %s316_s13 = scalar_lea.vmem %s32_s5, 512  ;;  %s320_s0 = scalar_lea.vmem %s32_s5, 2048 }
  0x1e   :  { %p317_p11 = scmp.ne.s32.totalorder %s32_s5, %s316_s13  ;;  %p321_p12 = scmp.lt.s32.totalorder %s32_s5, %s32_s5 }
  0x1f   :  { %p322_p13 = scmp.lt.s32.totalorder %s320_s0, %s316_s13 }
  0x21   :  { %p323_p0 = por %p322_p13, %p321_p12 }
  0x23   :  { %p324_p1 = pnand %p323_p0, %p317_p11 }
  0x25   :  { %327 = shalt.err (!%p324_p1)
}
  0x26   :  { %37 = dma.hbm_to_vmem [thread:$0]  %s504_s1, 512, %s32_s5, [#allocation6], %s403_s26, %s403_s26, %s404_s27  }
  0x27   :  { %42 = vsyncadd [#allocation6], 1536  ;;  %s406_s16 = smov [#allocation7]   ;;  %s328_s20 = scalar_lea.hbm %s505_s2, 512 }
  0x28   :  { %s43_s17 = sshll.u32 %s406_s16, 4  ;;  %p329_p2 = scmp.ne.s32.totalorder %s505_s2, %s328_s20  ;;  %s44_s17 = int_to_ptr.vmem [resolvable:$true] %s43_s17 }
  0x29   :  { %p332_p3 = scmp.lt.u32.totalorder %s328_s20, %s505_s2 }
  0x2b   :  { %p334_p4 = pnand %p332_p3, %p329_p2 }
  0x2d   :  { %337 = shalt.err (!%p334_p4)
}
  0x2e   :  { %s338_s25 = scalar_lea.vmem %s44_s17, 512  ;;  %s342_s1 = scalar_lea.vmem %s44_s17, 2048 }
  0x2f   :  { %p339_p5 = scmp.ne.s32.totalorder %s44_s17, %s338_s25  ;;  %p343_p6 = scmp.lt.s32.totalorder %s44_s17, %s44_s17 }
  0x30   :  { %p344_p7 = scmp.lt.s32.totalorder %s342_s1, %s338_s25 }
  0x32   :  { %p345_p8 = por %p344_p7, %p343_p6 }
  0x34   :  { %p346_p9 = pnand %p345_p8, %p339_p5 }
  0x36   :  { %349 = shalt.err (!%p346_p9)
}
  0x37   :  { %49 = dma.hbm_to_vmem [thread:$0]  %s505_s2, 512, %s44_s17, [#allocation6], %s403_s26, %s403_s26, %s404_s27  }
  0x38   :  { %394 = dma.done.wait [#allocation3], 2048  }
  0x39   :  { %395 = vsyncadd [#allocation3], 4294965248 }
  0x3a   :  { %396 = dma.done.wait [#allocation6], 4096  }
  0x3b   :  { %397 = vsyncadd [#allocation6], 4294963200  ;;  %s407_s30 = smov [#allocation9]   ;;  %v68_v0 = vld [vmem:[#allocation2] sm:$0xff]  ;;  %v69_v4 = vld [vmem:[#allocation2 + $0x8] sm:$0xff]  ;;  %s408_s2 = smov [#allocation8]  }
  0x3c   :  { %s263_s5 = sshll.u32 %s407_s30, 4  ;;  %v86_v1 = vld [vmem:[#allocation5] sm:$0xff]  ;;  %v87_v5 = vld [vmem:[#allocation5 + $0x8] sm:$0xff]  ;;  %v70_v8 = vld [vmem:[#allocation2 + $0x10] sm:$0xff]  ;;  %s253_s26 = sshll.u32 %s408_s2, 4  ;;  %s264_s5 = int_to_ptr.vmem [resolvable:$true] %s263_s5  ;;  %s254_s26 = int_to_ptr.vmem [resolvable:$true] %s253_s26 }
  0x3d   :  { %v104_v2 = vld [vmem:[#allocation7] sm:$0xff]  ;;  %v120_v3 = vsub.f32 %v68_v0, %v86_v1  ;;  %v105_v6 = vld [vmem:[#allocation7 + $0x8] sm:$0xff]  ;;  %v121_v7 = vsub.f32 %v69_v4, %v87_v5  ;;  %v88_v9 = vld [vmem:[#allocation5 + $0x10] sm:$0xff]  ;;  %s350_s27 = scalar_lea.vmem %s264_s5, 512  ;;  %p355_p11 = scmp.lt.s32.totalorder %s264_s5, %s264_s5 }
  0x3e   :  { %243 = vst [vmem:[#allocation9] sm:$0xff] %v104_v2  ;;  %244 = vst [vmem:[#allocation9 + $0x8] sm:$0xff] %v105_v6  ;;  %v106_v10 = vld [vmem:[#allocation7 + $0x10] sm:$0xff]  ;;  %v122_v12 = vsub.f32 %v70_v8, %v88_v9  ;;  %v71_v13 = vld [vmem:[#allocation2 + $0x18] sm:$0xff]  ;;  %p351_p10 = scmp.ne.s32.totalorder %s264_s5, %s350_s27  ;;  %p356_p12 = scmp.lt.s32.totalorder %s350_s27, %s350_s27 }
  0x3f   :  { %v136_v11 = vmul.f32 %v120_v3, %v104_v2  ;;  %245 = vst [vmem:[#allocation9 + $0x10] sm:$0xff] %v106_v10  ;;  %v89_v14 = vld [vmem:[#allocation5 + $0x18] sm:$0xff]  ;;  %v137_v16 = vmul.f32 %v121_v7, %v105_v6 }
  0x40   :  { %v107_v15 = vld [vmem:[#allocation7 + $0x18] sm:$0xff]  ;;  %v123_v17 = vsub.f32 %v71_v13, %v89_v14  ;;  %v138_v19 = vmul.f32 %v122_v12, %v106_v10  ;;  %p357_p13 = por %p356_p12, %p355_p11 }
  0x41   :  { %246 = vst [vmem:[#allocation9 + $0x18] sm:$0xff] %v107_v15  ;;  %v152_v18 = vmul.f32 %v136_v11, %v120_v3 }
  0x42   :  { %p358_p0 = pnand %p357_p13, %p351_p10 }
  0x44   :  { %361 = shalt.err (!%p358_p0)
}
  0x45   :  { %s362_s8 = scalar_lea.hbm %s507_s4, 512 }
  0x46   :  { %p363_p1 = scmp.ne.s32.totalorder %s507_s4, %s362_s8  ;;  %p366_p2 = scmp.lt.u32.totalorder %s362_s8, %s507_s4 }
  0x48   :  { %p368_p3 = pnand %p366_p2, %p363_p1 }
  0x4a   :  { %371 = shalt.err (!%p368_p3)
}
  0x4b   :  { %266 = dma.vmem_to_hbm [thread:$0]  %s264_s5, 512, %s507_s4, [#allocation10]   ;;  %v153_v20 = vmul.f32 %v137_v16, %v121_v7  ;;  %v139_v21 = vmul.f32 %v123_v17, %v107_v15  ;;  %239 = vst [vmem:[#allocation8] sm:$0xff] %v152_v18  ;;  %v154_v22 = vmul.f32 %v138_v19, %v122_v12 }
  0x4c   :  { %s372_s14 = scalar_lea.vmem %s254_s26, 512  ;;  %p377_p5 = scmp.lt.s32.totalorder %s254_s26, %s254_s26 }
  0x4d   :  { %240 = vst [vmem:[#allocation8 + $0x8] sm:$0xff] %v153_v20  ;;  %v155_v23 = vmul.f32 %v139_v21, %v123_v17  ;;  %241 = vst [vmem:[#allocation8 + $0x10] sm:$0xff] %v154_v22  ;;  %p373_p4 = scmp.ne.s32.totalorder %s254_s26, %s372_s14  ;;  %p378_p6 = scmp.lt.s32.totalorder %s372_s14, %s372_s14 }
  0x4f   :  { %242 = vst [vmem:[#allocation8 + $0x18] sm:$0xff] %v155_v23  ;;  %p379_p7 = por %p378_p6, %p377_p5 }
  0x51   :  { %p380_p8 = pnand %p379_p7, %p373_p4 }
  0x53   :  { %383 = shalt.err (!%p380_p8)
}
  0x54   :  { %s384_s4 = scalar_lea.hbm %s506_s3, 512 }
  0x55   :  { %p385_p9 = scmp.ne.s32.totalorder %s506_s3, %s384_s4  ;;  %p388_p10 = scmp.lt.u32.totalorder %s384_s4, %s506_s3 }
  0x57   :  { %p390_p11 = pnand %p388_p10, %p385_p9 }
  0x59   :  { %393 = shalt.err (!%p390_p11)
}
  0x5a   :  { %256 = dma.vmem_to_hbm [thread:$0]  %s254_s26, 512, %s506_s3, [#allocation4]  }
  0x5b   :  { %398 = dma.done.wait [#allocation4], 512  }
  0x5c   :  { %399 = vsyncadd [#allocation4], 4294966784 }
  0x5d   :  { %400 = dma.done.wait [#allocation10], 512  }
  0x5e   :  { %401 = vsyncadd [#allocation10], 4294966784 }
  0x5f   :  { %273 = vsyncpa [#allocation3], 1 }
  0x60   :  { %274 = vsyncpa [#allocation6], 1 }
  0x61   :  { %275 = vsyncpa [#allocation4], 1 }
  0x62   :  { %276 = vsyncpa [#allocation10], 1 }

</bundles_post_ra>
